<compile_context>
chip_gen: v6e
topology: v6e:2x2x1
jax: 0.10.0
libtpu: 0.0.40
codegen_flags: <defaults>
</compile_context>

<pallas_src>
from functools import partial

import jax
import jax.numpy as jnp
from jax.experimental import pallas as pl
from jax.experimental.pallas import tpu as pltpu


def _to_poincare_kernel(x_ref, o_ref, *, c, clip_r, clamp):
    x = x_ref[...]                                           # native dtype (T, D)
    sqrt_c = jnp.float32(float(c) ** 0.5)
    maxnorm = jnp.float32((1.0 - 1e-3) / (float(c) ** 0.5))

    # Single cross-lane reduction per row; math in f32 regardless of x dtype.
    xf = x.astype(jnp.float32)
    sumsq = jnp.sum(xf * xf, axis=-1, keepdims=True)         # (T, 1)
    x_norm = jnp.sqrt(sumsq)                                 # (T, 1)

    # Optional feature clipping: x <- x * min(1, clip_r / (||x|| + 1e-5)).
    if clip_r is not None:
        fac = jnp.minimum(jnp.float32(1.0),
                          jnp.float32(clip_r) / (x_norm + 1e-5))   # (T, 1)
    else:
        fac = jnp.float32(1.0)                               # scalar
    xc_norm = x_norm * fac                                   # ||x_clipped||

    # expmap0: gamma_1 = tanh(min(sqrt_c*||u||, clamp)) * u / (sqrt_c*||u||)
    # (argument is non-negative, so the lower clamp bound is dead).
    u_norm = jnp.maximum(xc_norm, 1e-5)
    arg = jnp.minimum(sqrt_c * u_norm, jnp.float32(clamp))
    gamma_scale = jnp.tanh(arg) / (sqrt_c * u_norm)          # (T, 1)

    # project: ||gamma_1|| = gamma_scale * ||x_clipped|| (analytic, no reduce).
    g_norm = jnp.maximum(gamma_scale * xc_norm, 1e-5)
    proj_scale = jnp.where(g_norm > maxnorm, maxnorm / g_norm,
                           jnp.float32(1.0))                 # (T, 1)

    # Everything collapses into one per-row scale and one full-tile multiply,
    # executed in the native input dtype (keeps bf16 tiles bf16 in VMEM).
    scale = fac * gamma_scale * proj_scale                   # (T, 1) f32
    o_ref[...] = x * scale.astype(x.dtype)


def _round_up(n, m):
    return (n + m - 1) // m * m


def _cdiv(a, b):
    return (a + b - 1) // b


def _vmem_budget():
    """(target block bytes, scoped vmem limit) tuned per TPU generation."""
    phys = 0
    try:
        info = pltpu.get_tpu_info()
        phys = int(getattr(info, "vmem_capacity_bytes", 0) or 0)
    except Exception:
        phys = 0
    if phys >= (100 << 20):          # v5e / v6e: 128 MiB physical VMEM
        return 8 << 20, 64 << 20
    return 6 << 20, 48 << 20          # v7x (64 MiB physical) or unknown


def _pick_row_tile(B, Dp_vmem, itemsize, row_align, target_bytes):
    if B <= row_align:
        return max(B, 1)              # single block equal to the full batch
    # Rows per block so one block is ~target_bytes (VMEM footprint uses the
    # lane-padded width even though the BlockSpec uses the true D).
    rt = (target_bytes // max(Dp_vmem * itemsize, 1)) // row_align * row_align
    rt = max(rt, row_align)
    rt = min(rt, _round_up(B, row_align))
    # Keep >= 4 balanced grid steps when the batch allows: v7x's 2 TensorCores
    # share the "parallel" batch axis, and 2 steps with a ragged tail idles one.
    if B >= 4 * row_align:
        rt = min(rt, _round_up(_cdiv(B, 4), row_align))
    return rt


def to_poincare(x, *, c=1.0, clip_r=None, clamp=15.0, row_tile=None):
    """Pallas implementation of ToPoincare.forward for 2-D x = (B, D)."""
    B, D = x.shape
    itemsize = jnp.dtype(x.dtype).itemsize
    row_align = 16 if itemsize == 2 else 8   # bf16 sublane packing
    target_bytes, vmem_limit = _vmem_budget()

    # VMEM tiles are lane-padded to 128 internally; only used for budgeting —
    # the BlockSpec itself uses the true D (no HBM padding / slicing).
    Dp_vmem = _round_up(max(D, 1), 128)

    if row_tile is None:
        row_tile = _pick_row_tile(B, Dp_vmem, itemsize, row_align, target_bytes)
    else:
        row_tile = min(_round_up(row_tile, row_align), _round_up(B, row_align))
        if B < row_align:
            row_tile = B

    # Double-buffered in + out blocks must fit the scoped limit; bump it if a
    # huge D forces a bigger-than-target block.
    # TODO(synk): for D so large that even an 8-row block exceeds physical
    # VMEM, split the feature axis with a two-pass (sumsq carry, then scale).
    block_bytes = _round_up(row_tile, row_align) * Dp_vmem * itemsize
    needed = 4 * block_bytes + (2 << 20)
    if needed > vmem_limit:
        vmem_limit = needed

    grid = _cdiv(B, row_tile)
    kernel = partial(_to_poincare_kernel, c=float(c), clip_r=clip_r,
                     clamp=float(clamp))
    out = pl.pallas_call(
        kernel,
        out_shape=jax.ShapeDtypeStruct((B, D), x.dtype),
        grid_spec=pltpu.PrefetchScalarGridSpec(
            num_scalar_prefetch=0,
            grid=(grid,),
            in_specs=[pl.BlockSpec((row_tile, D), lambda i: (i, 0))],
            out_specs=pl.BlockSpec((row_tile, D), lambda i: (i, 0)),
        ),
        compiler_params=pltpu.CompilerParams(
            dimension_semantics=("parallel",),
            vmem_limit_bytes=int(vmem_limit),
        ),
    )(x)
    return out


def _reference(x, *, c=1.0, clip_r=None, clamp=15.0):
    """Pure-JAX reference mirroring the torch module exactly."""
    x = x.astype(jnp.float32)
    sqrt_c = jnp.float32(c) ** 0.5
    if clip_r is not None:
        x_norm = jnp.linalg.norm(x, axis=-1, keepdims=True) + 1e-5
        x = x * jnp.minimum(jnp.ones_like(x_norm), clip_r / x_norm)
    u_norm = jnp.maximum(jnp.linalg.norm(x, axis=-1, keepdims=True), 1e-5)
    g = jnp.tanh(jnp.clip(sqrt_c * u_norm, -clamp, clamp)) * x / (sqrt_c * u_norm)
    n = jnp.maximum(jnp.linalg.norm(g, axis=-1, keepdims=True), 1e-5)
    maxnorm = (1.0 - 1e-3) / sqrt_c
    return jnp.where(n > maxnorm, g / n * maxnorm, g)


if __name__ == "__main__":
    key = jax.random.PRNGKey(0)
    c, clip_r = 1.0, 2.3   # ToPoincare(c=1.0, clip_r=2.3); xp is None (no params)

    # Case 1: small aligned-ish batch, D not a multiple of 128 (no padding is
    # done anywhere).  Scale up so both project branches fire.
    B, D = 16, 32
    x = jax.random.normal(key, (B, D), dtype=jnp.float32) * 2.0
    out = jax.block_until_ready(to_poincare(x, c=c, clip_r=clip_r))
    ref = _reference(x, c=c, clip_r=clip_r)
    assert out.shape == x.shape and out.dtype == x.dtype
    assert jnp.allclose(out, ref, atol=1e-5, rtol=1e-5)

    # clip_r=None path (default in __init__).
    out2 = jax.block_until_ready(to_poincare(x, c=c, clip_r=None))
    assert jnp.allclose(out2, _reference(x, c=c, clip_r=None),
                        atol=1e-5, rtol=1e-5)

    # Case 2: ragged batch (B not a multiple of 8) and D not a multiple of 128
    # — exercises the masked last block / masked lane stores with zero padding.
    B2, D2 = 13, 200
    x2 = jax.random.normal(jax.random.PRNGKey(1), (B2, D2), dtype=jnp.float32)
    out3 = jax.block_until_ready(to_poincare(x2, c=c, clip_r=clip_r))
    assert jnp.allclose(out3, _reference(x2, c=c, clip_r=clip_r),
                        atol=1e-5, rtol=1e-5)

    # Case 3: batch smaller than the sublane alignment (full-batch block).
    B3, D3 = 3, 48
    x3 = jax.random.normal(jax.random.PRNGKey(2), (B3, D3), dtype=jnp.float32) * 3.0
    out4 = jax.block_until_ready(to_poincare(x3, c=c, clip_r=None))
    assert jnp.allclose(out4, _reference(x3, c=c, clip_r=None),
                        atol=1e-5, rtol=1e-5)

    print("KERNEL_OK")
</pallas_src>

<mosaic_0001>
module attributes {stable_mosaic.version = 11 : i64} {
  func.func @_to_poincare_kernel(%arg0: i32, %arg1: memref<16x32xf32, #tpu.memory_space<vmem>>, %arg2: memref<16x32xf32, #tpu.memory_space<vmem>>) attributes {dimension_semantics = [#tpu.dimension_semantics<parallel>], iteration_bounds = array<i64: 1>, scalar_prefetch = 0 : i64, scratch_operands = 0 : i64, tpu.core_type = #tpu.core_type<tc>, window_params = [{transform_indices = @transform_0, window_bounds = array<i64: 16, 32>}, {transform_indices = @transform_1, window_bounds = array<i64: 16, 32>}]} {
    %c0 = arith.constant 0 : index
    %c0_0 = arith.constant 0 : index
    %0 = vector.load %arg1[%c0, %c0_0] : memref<16x32xf32, #tpu.memory_space<vmem>>, vector<16x32xf32>
    %1 = arith.mulf %0, %0 : vector<16x32xf32>
    %cst = arith.constant dense<0.000000e+00> : vector<16xf32>
    %2 = vector.multi_reduction <add>, %1, %cst [1] : vector<16x32xf32> to vector<16xf32>
    %3 = vector.shape_cast %2 : vector<16xf32> to vector<16x1xf32>
    %4 = math.sqrt %3 : vector<16x1xf32>
    %cst_1 = arith.constant 9.99999974E-6 : f32
    %5 = vector.broadcast %cst_1 : f32 to vector<16x1xf32>
    %6 = arith.addf %4, %5 : vector<16x1xf32>
    %cst_2 = arith.constant 2.300000e+00 : f32
    %7 = vector.broadcast %cst_2 : f32 to vector<16x1xf32>
    %8 = arith.divf %7, %6 : vector<16x1xf32>
    %cst_3 = arith.constant 1.000000e+00 : f32
    %9 = vector.broadcast %cst_3 : f32 to vector<16x1xf32>
    %10 = arith.minimumf %9, %8 : vector<16x1xf32>
    %11 = arith.mulf %4, %10 : vector<16x1xf32>
    %cst_4 = arith.constant 9.99999974E-6 : f32
    %12 = vector.broadcast %cst_4 : f32 to vector<16x1xf32>
    %13 = arith.maximumf %11, %12 : vector<16x1xf32>
    %cst_5 = arith.constant 1.000000e+00 : f32
    %14 = vector.broadcast %cst_5 : f32 to vector<16x1xf32>
    %15 = arith.mulf %14, %13 : vector<16x1xf32>
    %cst_6 = arith.constant 1.500000e+01 : f32
    %16 = vector.broadcast %cst_6 : f32 to vector<16x1xf32>
    %17 = arith.minimumf %15, %16 : vector<16x1xf32>
    %18 = math.tanh %17 : vector<16x1xf32>
    %cst_7 = arith.constant 1.000000e+00 : f32
    %19 = vector.broadcast %cst_7 : f32 to vector<16x1xf32>
    %20 = arith.mulf %19, %13 : vector<16x1xf32>
    %21 = arith.divf %18, %20 : vector<16x1xf32>
    %22 = arith.mulf %21, %11 : vector<16x1xf32>
    %cst_8 = arith.constant 9.99999974E-6 : f32
    %23 = vector.broadcast %cst_8 : f32 to vector<16x1xf32>
    %24 = arith.maximumf %22, %23 : vector<16x1xf32>
    %cst_9 = arith.constant 9.990000e-01 : f32
    %25 = vector.broadcast %cst_9 : f32 to vector<16x1xf32>
    %26 = arith.cmpf ogt, %24, %25 : vector<16x1xf32>
    %cst_10 = arith.constant 9.990000e-01 : f32
    %27 = vector.broadcast %cst_10 : f32 to vector<16x1xf32>
    %28 = arith.divf %27, %24 : vector<16x1xf32>
    %cst_11 = arith.constant 1.000000e+00 : f32
    %29 = vector.broadcast %cst_11 : f32 to vector<16x1xf32>
    %30 = arith.select %26, %28, %29 : vector<16x1xi1>, vector<16x1xf32>
    %31 = arith.mulf %10, %21 : vector<16x1xf32>
    %32 = arith.mulf %31, %30 : vector<16x1xf32>
    %33 = vector.broadcast %32 : vector<16x1xf32> to vector<16x32xf32>
    %34 = arith.mulf %0, %33 : vector<16x32xf32>
    %c0_12 = arith.constant 0 : index
    %c0_13 = arith.constant 0 : index
    %35 = vector.load %arg2[%c0_12, %c0_13] : memref<16x32xf32, #tpu.memory_space<vmem>>, vector<16x32xf32>
    tpu.vector_store %arg2[%c0_12, %c0_13], %34 {strides = array<i32>} : memref<16x32xf32, #tpu.memory_space<vmem>>, vector<16x32xf32>,
    return
  }
  func.func @transform_0(%arg0: i32) -> (i32, i32) {
    %c0_i32 = arith.constant 0 : i32
    %c0_i32_0 = arith.constant 0 : i32
    return %arg0, %c0_i32 : i32, i32
  }
  func.func @transform_1(%arg0: i32) -> (i32, i32) {
    %c0_i32 = arith.constant 0 : i32
    %c0_i32_0 = arith.constant 0 : i32
    return %arg0, %c0_i32 : i32, i32
  }
}

</mosaic_0001>

<bundles_post_ra>
// kernel: tpu_custom_call.1
= control target key start
LH: loop header
LB: loop body
LE: loop exit
PB: predicated region body
PF: predicated region fallthrough
CT: control target
= control target key end

     0   :  { %6 = vsyncpa [#allocation3], 0  ;;  %s213_s0 = inlined_call_operand.hbm [shape: f32[16,32], index: 0, kind: input, shape index: {}]   ;;  %s214_s1 = inlined_call_operand.hbm [shape: f32[16,32], index: 1, kind: output, shape index: {}]  }
   0x1   :  { %7 = vsyncpa [#allocation4], 0  ;;  %s173_s6 = smov [#allocation2]  }
   0x2   :  { %s13_s7 = sshll.u32 %s173_s6, 4  ;;  %s14_s7 = int_to_ptr.vmem [resolvable:$true] %s13_s7 }
   0x3   :  { %s137_s8 = scalar_lea.vmem %s14_s7, 256  ;;  %p142_p1 = scmp.lt.s32.totalorder %s14_s7, %s14_s7 }
   0x4   :  { %p138_p0 = scmp.ne.s32.totalorder %s14_s7, %s137_s8  ;;  %p143_p2 = scmp.lt.s32.totalorder %s137_s8, %s137_s8 }
   0x6   :  { %p144_p3 = por %p143_p2, %p142_p1 }
   0x8   :  { %p145_p4 = pnand %p144_p3, %p138_p0 }
   0xa   :  { %148 = shalt.err (!%p145_p4)
}
   0xb   :  { %s174_s9 = smov 128   ;;  %s175_s10 = smov 8  }
   0xc   :  { %19 = dma.hbm_to_vmem [thread:$0]  %s213_s0, 256, %s14_s7, [#allocation3], %s174_s9, %s174_s9, %s175_s10  }
   0xd   :  { %169 = dma.done.wait [#allocation3], 256  }
   0xe   :  { %170 = vsyncadd [#allocation3], 4294967040  ;;  %v193_v0 = vld [vmem:[#allocation2] sm:$0xff]  ;;  %vm27_vm0 = vcmask 261120   ;;  %v195_v1 = vld [vmem:[#allocation2 + $0x8] sm:$0xff]  ;;  %s176_s0 = smov [#allocation5]  }
   0xf   :  { %v25_v2 = vmul.f32 %v193_v0, %v193_v0  ;;  %v26_v3 = vmul.f32 %v195_v1, %v195_v1  ;;  %s93_s13 = sshll.u32 %s176_s0, 4  ;;  %s94_s13 = int_to_ptr.vmem [resolvable:$true] %s93_s13 }
  0x10   :  { %s149_s14 = scalar_lea.vmem %s94_s13, 256  ;;  %p154_p6 = scmp.lt.s32.totalorder %s94_s13, %s94_s13 }
  0x11   :  { %v28_v4 = vsel %vm27_vm0, %v25_v2, 0.0  ;;  %v31_v5 = vsel %vm27_vm0, %v26_v3, 0.0  ;;  %p150_p5 = scmp.ne.s32.totalorder %s94_s13, %s149_s14  ;;  %p155_p7 = scmp.lt.s32.totalorder %s149_s14, %s149_s14 }
  0x12   :  { %29 = vadd.xlane.f32.xlu0 %v28_v4 }
  0x13   :  { %p156_p8 = por %p155_p7, %p154_p6 }
  0x15   :  { %p157_p9 = pnand %p156_p8, %p150_p5 }
  0x16   :  { %32 = vadd.xlane.f32.xlu0 %v31_v5 }
  0x9b   :  { %v30_v6 = vpop.xlane.xlu0 %29 }
  0x9c   :  { %109 = vrsqrt.f32 %v30_v6  ;;  %vm36_vm1 = vcmp.eq.f32.partialorder %v30_v6, inf  ;;  %v39_v10 = vand.u32 2147483648, %v30_v6  ;;  %vm38_vm2 = vcmp.eq.f32.partialorder %v30_v6, 0.0 }
  0x9f   :  { %v33_v7 = vpop.xlane.xlu0 %32 }
  0xa0   :  { %111 = vrsqrt.f32 %v33_v7  ;;  %vm43_vm3 = vcmp.eq.f32.partialorder %v33_v7, inf  ;;  %v46_v16 = vand.u32 2147483648, %v33_v7  ;;  %vm45_vm4 = vcmp.eq.f32.partialorder %v33_v7, 0.0 }
  0xa9   :  { %v110_v8 = vpop.eup %109 }
  0xaa   :  { %v35_v9 = vmul.f32 %v110_v8, %v30_v6 }
  0xac   :  { %v37_v11 = vsel %vm36_vm1, %v30_v6, %v35_v9 }
  0xad   :  { %v112_v12 = vpop.eup %111  ;;  %v40_v13 = vsel %vm38_vm2, %v39_v10, %v37_v11 }
  0xae   :  { %v48_v14 = vadd.f32 1e-05, %v40_v13  ;;  %v42_v15 = vmul.f32 %v112_v12, %v33_v7 }
  0xb0   :  { %113 = vrcp.f32 %v48_v14  ;;  %v44_v17 = vsel %vm43_vm3, %v33_v7, %v42_v15 }
  0xb1   :  { %v47_v18 = vsel %vm45_vm4, %v46_v16, %v44_v17 }
  0xb2   :  { %v49_v19 = vadd.f32 1e-05, %v47_v18 }
  0xb4   :  { %115 = vrcp.f32 %v49_v19 }
  0xbd   :  { %v114_v20 = vpop.eup %113 }
  0xbe   :  { %v51_v21 = vmul.f32 2.3, %v114_v20 }
  0xc0   :  { %v54_v22 = vmin.f32 %v51_v21, 1.0 }
  0xc1   :  { %v116_v23 = vpop.eup %115 }
  0xc2   :  { %v53_v24 = vmul.f32 2.3, %v116_v23  ;;  %v56_v25 = vmul.f32 %v54_v22, %v40_v13 }
  0xc4   :  { %v55_v26 = vmin.f32 %v53_v24, 1.0  ;;  %v58_v27 = vmax.f32 %v56_v25, 1e-05 }
  0xc6   :  { %v57_v28 = vmul.f32 %v55_v26, %v47_v18  ;;  %v60_v29 = vmin.f32 %v58_v27, 15.0  ;;  %117 = vrcp.f32 %v58_v27 }
  0xc8   :  { %v59_v30 = vmax.f32 %v57_v28, 1e-05  ;;  %119 = vtanh.f32 %v60_v29 }
  0xca   :  { %v61_v31 = vmin.f32 %v59_v30, 15.0  ;;  %121 = vrcp.f32 %v59_v30 }
  0xcc   :  { %123 = vtanh.f32 %v61_v31 }
  0xd3   :  { %v118_v32 = vpop.eup %117 }
  0xd5   :  { %v120_v33 = vpop.eup %119 }
  0xd6   :  { %v65_v34 = vmul.f32 %v120_v33, %v118_v32 }
  0xd7   :  { %v122_v35 = vpop.eup %121 }
  0xd8   :  { %v68_v36 = vmul.f32 %v65_v34, %v56_v25  ;;  %v80_v44 = vmul.f32 %v65_v34, %v54_v22 }
  0xd9   :  { %v124_v37 = vpop.eup %123 }
  0xda   :  { %v67_v38 = vmul.f32 %v124_v37, %v122_v35  ;;  %v70_v39 = vmax.f32 %v68_v36, 1e-05 }
  0xdc   :  { %v69_v40 = vmul.f32 %v67_v38, %v57_v28  ;;  %125 = vrcp.f32 %v70_v39  ;;  %vm72_vm5 = vcmp.gt.f32.partialorder %v70_v39, 0.999  ;;  %v81_v49 = vmul.f32 %v67_v38, %v55_v26 }
  0xde   :  { %v71_v41 = vmax.f32 %v69_v40, 1e-05 }
  0xe0   :  { %127 = vrcp.f32 %v71_v41  ;;  %vm73_vm6 = vcmp.gt.f32.partialorder %v71_v41, 0.999 }
  0xe9   :  { %v126_v42 = vpop.eup %125 }
  0xea   :  { %v75_v43 = vmul.f32 0.999, %v126_v42 }
  0xec   :  { %v78_v45 = vsel %vm72_vm5, %v75_v43, 1.0 }
  0xed   :  { %v128_v46 = vpop.eup %127  ;;  %v82_v47 = vmul.f32 %v80_v44, %v78_v45 }
  0xee   :  { %v77_v48 = vmul.f32 0.999, %v128_v46 }
  0xef   :  { %v84_v50 = vmul.f32 %v82_v47, %v193_v0 }
  0xf0   :  { %v79_v51 = vsel %vm73_vm6, %v77_v48, 1.0 }
  0xf1   :  { %v83_v52 = vmul.f32 %v81_v49, %v79_v51  ;;  %86 = vst.msk [vmem:[#allocation5] sm:$0xff] %vm27_vm0, %v84_v50 }
  0xf3   :  { %v85_v53 = vmul.f32 %v83_v52, %v195_v1 }
  0xf5   :  { %87 = vst.msk [vmem:[#allocation5 + $0x8] sm:$0xff] %vm27_vm0, %v85_v53 }
  0xf6   :  { %160 = shalt.err (!%p157_p9)
}
  0xf7   :  { %99 = dma.vmem_to_hbm [thread:$0]  %s94_s13, 256, %s214_s1, [#allocation4], %s174_s9, %s174_s9, %s175_s10  }
  0xf8   :  { %171 = dma.done.wait [#allocation4], 256  }
  0xf9   :  { %172 = vsyncadd [#allocation4], 4294967040 }
  0xfa   :  { %103 = vsyncpa [#allocation3], 1 }
  0xfb   :  { %104 = vsyncpa [#allocation4], 1 }

</bundles_post_ra>
